<compile_context>
chip_gen: v7x
topology: tpu7x:2x2x1
jax: 0.10.0
libtpu: 0.0.40
codegen_flags: <defaults>
</compile_context>

<pallas_src>
import math
import types

import numpy as np
import jax
import jax.numpy as jnp
from jax.experimental import pallas as pl
from jax.experimental.pallas import tpu as pltpu


# ----------------------------------------------------------------------------
# Parameter / buffer construction (matches rotary_embedding_torch semantics)
# ----------------------------------------------------------------------------
def int_to_tuple(x):
    if isinstance(x, int):
        return (x, x)
    return tuple(x)


def axial_pixel_freqs(n_p_y, n_p_x, dim_head, max_freq=256.0):
    """RotaryEmbedding(dim_head // 4, freqs_for='pixel').get_axial_freqs(n_p_y, n_p_x)
    computed in float64."""
    dim = dim_head // 4                                   # rotary dim per axis
    base = np.linspace(1.0, max_freq / 2.0, dim // 2, dtype=np.float64) * np.pi

    def axis_freqs(n):
        pos = np.linspace(-1.0, 1.0, n, dtype=np.float64)            # (n,)
        f = pos[:, None] * base[None, :]                              # (n, dim//2)
        f = np.repeat(f, 2, axis=-1)                                  # (n, dim) '(n r)' r=2
        return f

    fy = axis_freqs(n_p_y)                                # (n_p_y, dim)
    fx = axis_freqs(n_p_x)                                # (n_p_x, dim)
    fy_b = np.broadcast_to(fy[:, None, :], (n_p_y, n_p_x, dim))
    fx_b = np.broadcast_to(fx[None, :, :], (n_p_y, n_p_x, dim))
    return np.concatenate([fy_b, fx_b], axis=-1)          # (n_p_y, n_p_x, 2*dim)


def build_rope_tables(freqs64, dim_head):
    """Host-side (f64) cos / sign-folded, parity-masked sin tables, padded to
    the full head dim and flattened to (1, N * dim_head) f32.

    out[j] = x[j]*cos[j] + x[j+1]*sin_even[j] + x[j-1]*sin_odd[j]
      even channels pair with channel+1 (weight -sin), odd channels pair with
      channel-1 (weight +sin); channels past rot_dim pass through (cos=1, sin=0)."""
    n_tok, rot_dim = freqs64.shape
    cos = np.ones((n_tok, dim_head), dtype=np.float64)
    sin = np.zeros((n_tok, dim_head), dtype=np.float64)
    cos[:, :rot_dim] = np.cos(freqs64)
    sin[:, :rot_dim] = np.sin(freqs64)

    sin_signed = sin.copy()
    sin_signed[:, 0::2] *= -1.0                    # rotate_half sign on even channels

    sin_even = np.zeros_like(sin_signed)
    sin_even[:, 0::2] = sin_signed[:, 0::2]        # multiplies x[j+1]
    sin_odd = np.zeros_like(sin_signed)
    sin_odd[:, 1::2] = sin_signed[:, 1::2]         # multiplies x[j-1]

    flat = n_tok * dim_head
    to_f32 = lambda a: jnp.asarray(a.reshape(1, flat).astype(np.float32))
    return to_f32(cos), to_f32(sin_even), to_f32(sin_odd)


# ----------------------------------------------------------------------------
# Pallas kernel
# ----------------------------------------------------------------------------
def _rope_kernel(cos_ref, sine_ref, sino_ref, q_ref, k_ref, qo_ref, ko_ref):
    # Tables loaded once per grid step and reused for both q and k.  The
    # (1, tile_l) operands broadcast over the row tile via sublane-broadcast
    # reads inside the VPU muls (no explicitly materialized broadcast).
    cos = cos_ref[...]            # (1, tile_l) f32
    s_e = sine_ref[...]
    s_o = sino_ref[...]
    tl = q_ref.shape[-1]

    def rotate(x_ref, o_ref):
        x = x_ref[...]                                   # (tile_bh, tile_l)
        # Pair swap via XLU lane rotations (static shifts), VPU does the rest:
        #   x_next[j] = x[j+1]  (partner of even channels, weight sin_even)
        #   x_prev[j] = x[j-1]  (partner of odd channels,  weight sin_odd)
        # Wrap-around lanes always hit a zero sin coefficient because lane-tile
        # boundaries fall on token boundaries, so tokens/channels never mix.
        x_next = pltpu.roll(x, shift=tl - 1, axis=1)
        x_prev = pltpu.roll(x, shift=1, axis=1)
        o_ref[...] = (x * cos + x_next * s_e + x_prev * s_o).astype(o_ref.dtype)

    rotate(q_ref, qo_ref)
    rotate(k_ref, ko_ref)


# ----------------------------------------------------------------------------
# Tiling / VMEM heuristics
# ----------------------------------------------------------------------------
def _lcm(a, b):
    return a * b // math.gcd(a, b)


def _vmem_budgets():
    """(io_budget_bytes, vmem_limit_bytes), sized per TPU generation.

    v7x has 64 MiB physical VMEM per TensorCore, v5e/v6e have 128 MiB.  Falls
    back to the conservative (v7x-safe) numbers if the query fails."""
    cap = 0
    try:
        cap = int(getattr(pltpu.get_tpu_info(), "vmem_capacity_bytes", 0) or 0)
    except Exception:
        cap = 0
    if cap > (64 << 20):
        return 16 << 20, 64 << 20          # v5e / v6e
    return 12 << 20, 48 << 20              # v7x or unknown


def _choose_tiles(bh, n_tok, d, itemsize, io_budget_bytes):
    """Pick (tile_bh, tile_l) for the (BH, N*D) view.

    tile_l: multiple of lcm(128, d) dividing L (token boundary => pair boundary,
      lane dense), or the full extent L.
    tile_bh: multiple of 8 (16 for bf16) or the full extent; prefers exact
      divisors of BH and an even total step count >= 4 (v7x TC balance),
      sized against io_budget_bytes including double-buffered I/O streams and
      the f32 roll / upcast temporaries."""
    L = n_tok * d
    row_align = 16 if itemsize == 2 else 8
    elem_bytes = 4 * 2 * itemsize + 4 * 4   # q,k,qo,ko double-buffered + f32 temps
    max_elems = max(row_align * 128, io_budget_bytes // elem_bytes)

    # ---- lane tile ----
    tile_l = L
    if L * row_align > max_elems:
        unit = _lcm(128, d)
        t = (max_elems // row_align // unit) * unit
        while t >= unit:
            if L % t == 0:
                tile_l = t
                break
            t -= unit
    lane_steps = L // tile_l

    # ---- row tile ----
    cap_rows = max(1, max_elems // tile_l)
    if bh < row_align:
        cands = [bh]                                   # full extent (legal)
    else:
        hi = max(row_align, (min(cap_rows, bh) // row_align) * row_align)
        cands = list(range(row_align, hi + 1, row_align))
        if bh <= cap_rows:
            cands.append(bh)                           # single full-extent block

    def steps(t):
        return (-(-bh // t)) * lane_steps

    def pick(cond):
        exact = [t for t in cands if cond(t) and bh % t == 0]
        if exact:
            return max(exact)
        anyt = [t for t in cands if cond(t)]
        return max(anyt) if anyt else None

    tile_bh = None
    for need_even, min_steps in ((True, 4), (True, 2), (False, 1)):
        tile_bh = pick(lambda t, ne=need_even, ms=min_steps:
                       steps(t) >= ms and (not ne or steps(t) % 2 == 0))
        if tile_bh is not None:
            break
    if tile_bh is None:
        tile_bh = cands[-1]
    return tile_bh, tile_l


# ----------------------------------------------------------------------------
# Wrapper
# ----------------------------------------------------------------------------
def _image_rope_apply(q, k, cos_pad, sin_even, sin_odd):
    """q, k: (B, H, N, D).  Tables: (1, N*D) f32.  q/k are donated + aliased
    into the outputs (rotated in place); do not reuse them after this call."""
    B, H, N, D = q.shape
    BH, L = B * H, N * D
    q2 = q.reshape(BH, L)
    k2 = k.reshape(BH, L)

    io_budget, vmem_limit = _vmem_budgets()
    tile_bh, tile_l = _choose_tiles(BH, N, D, jnp.dtype(q.dtype).itemsize, io_budget)
    grid = (pl.cdiv(BH, tile_bh), L // tile_l)

    table_spec = pl.BlockSpec((1, tile_l), lambda i, j: (0, j))      # tiny, VMEM-resident
    row_spec = pl.BlockSpec((tile_bh, tile_l), lambda i, j: (i, j))  # lane-dense tiles

    qo, ko = pl.pallas_call(
        _rope_kernel,
        out_shape=(
            jax.ShapeDtypeStruct((BH, L), q.dtype),
            jax.ShapeDtypeStruct((BH, L), k.dtype),
        ),
        grid=grid,
        in_specs=[table_spec, table_spec, table_spec, row_spec, row_spec],
        out_specs=(row_spec, row_spec),
        input_output_aliases={3: 0, 4: 1},                           # rotate q/k in place
        compiler_params=pltpu.CompilerParams(
            dimension_semantics=("parallel", "parallel"),
            vmem_limit_bytes=vmem_limit),
    )(cos_pad, sin_even, sin_odd, q2, k2)

    return qo.reshape(B, H, N, D), ko.reshape(B, H, N, D)


# Donation makes the pallas_call aliasing effective end-to-end: XLA does not
# insert a defensive copy of q/k before the custom call.
image_rope_apply = jax.jit(_image_rope_apply, donate_argnums=(0, 1))


# ----------------------------------------------------------------------------
# Module-equivalent wrapper
# ----------------------------------------------------------------------------
class ImageRoPE:
    def __init__(self, config):
        h, w = int_to_tuple(config.sample_size)
        p_y, p_x = int_to_tuple(config.patch_size)
        self.n_p_y = h // p_y
        self.n_p_x = w // p_x
        dim_head = config.d_model // config.n_heads
        if dim_head % 4 != 0:
            raise ValueError(f"dim_head={dim_head} must be divisible by 4 for axial RoPE")
        self.dim_head = dim_head

        freqs = axial_pixel_freqs(self.n_p_y, self.n_p_x, dim_head, max_freq=256.0)
        self.rot_dim = freqs.shape[-1]
        if self.rot_dim > dim_head:
            raise ValueError(f"rot_dim={self.rot_dim} exceeds dim_head={dim_head}")
        n = self.n_p_y * self.n_p_x
        self.freqs64 = freqs.reshape(n, self.rot_dim)            # f64, for reference
        self.cos_pad, self.sin_even, self.sin_odd = build_rope_tables(
            self.freqs64, dim_head)

    def __call__(self, q, k):
        # NOTE: q and k are donated (rotated in place); do not reuse them after.
        return image_rope_apply(q, k, self.cos_pad, self.sin_even, self.sin_odd)


# ----------------------------------------------------------------------------
# Pure-numpy float64 reference (mirrors apply_rotary_emb on x.double())
# ----------------------------------------------------------------------------
def ref_apply_np(x, freqs64, rot_dim):
    x_np = np.asarray(x)
    x64 = x_np.astype(np.float64)
    xm, xr = x64[..., :rot_dim], x64[..., rot_dim:]
    x1, x2 = xm[..., 0::2], xm[..., 1::2]
    rh = np.stack([-x2, x1], axis=-1).reshape(xm.shape)
    out_m = xm * np.cos(freqs64) + rh * np.sin(freqs64)
    return np.concatenate([out_m, xr], axis=-1).astype(x_np.dtype)


if __name__ == "__main__":
    config = types.SimpleNamespace(sample_size=16, patch_size=2, d_model=64, n_heads=4)
    rope = ImageRoPE(config)

    B, H = 2, config.n_heads
    N = rope.n_p_y * rope.n_p_x          # 8 * 8 = 64
    D = rope.dim_head                    # 64 // 4 = 16

    key = jax.random.PRNGKey(0)
    kq, kk = jax.random.split(key)
    q = jax.random.normal(kq, (B, H, N, D), dtype=jnp.float32)
    k = jax.random.normal(kk, (B, H, N, D), dtype=jnp.float32)

    # f64 reference computed BEFORE the kernel call (q/k are donated / rotated
    # in place by the call).
    q_ref = ref_apply_np(q, rope.freqs64, rope.rot_dim)
    k_ref = ref_apply_np(k, rope.freqs64, rope.rot_dim)

    q_out, k_out = rope(q, k)
    q_out = jax.block_until_ready(q_out)
    k_out = jax.block_until_ready(k_out)

    np.testing.assert_allclose(np.asarray(q_out), q_ref, rtol=1e-5, atol=1e-5)
    np.testing.assert_allclose(np.asarray(k_out), k_ref, rtol=1e-5, atol=1e-5)

    print("KERNEL_OK")
</pallas_src>

<mosaic_0001>
module attributes {stable_mosaic.version = 11 : i64} {
  func.func @_rope_kernel(%arg0: i32, %arg1: i32, %arg2: memref<1x1024xf32, #tpu.memory_space<vmem>>, %arg3: memref<1x1024xf32, #tpu.memory_space<vmem>>, %arg4: memref<1x1024xf32, #tpu.memory_space<vmem>>, %arg5: memref<8x1024xf32, #tpu.memory_space<vmem>>, %arg6: memref<8x1024xf32, #tpu.memory_space<vmem>>, %arg7: memref<8x1024xf32, #tpu.memory_space<vmem>>, %arg8: memref<8x1024xf32, #tpu.memory_space<vmem>>) attributes {dimension_semantics = [#tpu.dimension_semantics<parallel>, #tpu.dimension_semantics<parallel>], iteration_bounds = array<i64: 1, 1>, scalar_prefetch = 0 : i64, scratch_operands = 0 : i64, tpu.core_type = #tpu.core_type<tc>, window_params = [{transform_indices = @transform_0, window_bounds = array<i64: 1, 1024>}, {transform_indices = @transform_1, window_bounds = array<i64: 1, 1024>}, {transform_indices = @transform_2, window_bounds = array<i64: 1, 1024>}, {transform_indices = @transform_3, window_bounds = array<i64: 8, 1024>}, {transform_indices = @transform_4, window_bounds = array<i64: 8, 1024>}, {transform_indices = @transform_5, window_bounds = array<i64: 8, 1024>}, {transform_indices = @transform_6, window_bounds = array<i64: 8, 1024>}]} {
    %c0 = arith.constant 0 : index
    %c0_0 = arith.constant 0 : index
    %0 = vector.load %arg2[%c0, %c0_0] : memref<1x1024xf32, #tpu.memory_space<vmem>>, vector<1x1024xf32>
    %c0_1 = arith.constant 0 : index
    %c0_2 = arith.constant 0 : index
    %1 = vector.load %arg3[%c0_1, %c0_2] : memref<1x1024xf32, #tpu.memory_space<vmem>>, vector<1x1024xf32>
    %c0_3 = arith.constant 0 : index
    %c0_4 = arith.constant 0 : index
    %2 = vector.load %arg4[%c0_3, %c0_4] : memref<1x1024xf32, #tpu.memory_space<vmem>>, vector<1x1024xf32>
    %c0_5 = arith.constant 0 : index
    %c0_6 = arith.constant 0 : index
    %3 = vector.load %arg5[%c0_5, %c0_6] : memref<8x1024xf32, #tpu.memory_space<vmem>>, vector<8x1024xf32>
    %c1023_i32 = arith.constant 1023 : i32
    %4 = tpu.dynamic_rotate %3 by %c1023_i32 dim 1 : vector<8x1024xf32>, i32 -> vector<8x1024xf32>
    %c1_i32 = arith.constant 1 : i32
    %5 = tpu.dynamic_rotate %3 by %c1_i32 dim 1 : vector<8x1024xf32>, i32 -> vector<8x1024xf32>
    %6 = vector.broadcast %0 : vector<1x1024xf32> to vector<8x1024xf32>
    %7 = arith.mulf %3, %6 : vector<8x1024xf32>
    %8 = vector.broadcast %1 : vector<1x1024xf32> to vector<8x1024xf32>
    %9 = arith.mulf %4, %8 : vector<8x1024xf32>
    %10 = arith.addf %7, %9 : vector<8x1024xf32>
    %11 = vector.broadcast %2 : vector<1x1024xf32> to vector<8x1024xf32>
    %12 = arith.mulf %5, %11 : vector<8x1024xf32>
    %13 = arith.addf %10, %12 : vector<8x1024xf32>
    %c0_7 = arith.constant 0 : index
    %c0_8 = arith.constant 0 : index
    %14 = vector.load %arg7[%c0_7, %c0_8] : memref<8x1024xf32, #tpu.memory_space<vmem>>, vector<8x1024xf32>
    tpu.vector_store %arg7[%c0_7, %c0_8], %13 {strides = array<i32>} : memref<8x1024xf32, #tpu.memory_space<vmem>>, vector<8x1024xf32>,
    %c0_9 = arith.constant 0 : index
    %c0_10 = arith.constant 0 : index
    %15 = vector.load %arg6[%c0_9, %c0_10] : memref<8x1024xf32, #tpu.memory_space<vmem>>, vector<8x1024xf32>
    %c1023_i32_11 = arith.constant 1023 : i32
    %16 = tpu.dynamic_rotate %15 by %c1023_i32_11 dim 1 : vector<8x1024xf32>, i32 -> vector<8x1024xf32>
    %c1_i32_12 = arith.constant 1 : i32
    %17 = tpu.dynamic_rotate %15 by %c1_i32_12 dim 1 : vector<8x1024xf32>, i32 -> vector<8x1024xf32>
    %18 = vector.broadcast %0 : vector<1x1024xf32> to vector<8x1024xf32>
    %19 = arith.mulf %15, %18 : vector<8x1024xf32>
    %20 = vector.broadcast %1 : vector<1x1024xf32> to vector<8x1024xf32>
    %21 = arith.mulf %16, %20 : vector<8x1024xf32>
    %22 = arith.addf %19, %21 : vector<8x1024xf32>
    %23 = vector.broadcast %2 : vector<1x1024xf32> to vector<8x1024xf32>
    %24 = arith.mulf %17, %23 : vector<8x1024xf32>
    %25 = arith.addf %22, %24 : vector<8x1024xf32>
    %c0_13 = arith.constant 0 : index
    %c0_14 = arith.constant 0 : index
    %26 = vector.load %arg8[%c0_13, %c0_14] : memref<8x1024xf32, #tpu.memory_space<vmem>>, vector<8x1024xf32>
    tpu.vector_store %arg8[%c0_13, %c0_14], %25 {strides = array<i32>} : memref<8x1024xf32, #tpu.memory_space<vmem>>, vector<8x1024xf32>,
    return
  }
  func.func @transform_0(%arg0: i32, %arg1: i32) -> (i32, i32) {
    %c0_i32 = arith.constant 0 : i32
    %c0_i32_0 = arith.constant 0 : i32
    return %c0_i32, %arg1 : i32, i32
  }
  func.func @transform_1(%arg0: i32, %arg1: i32) -> (i32, i32) {
    %c0_i32 = arith.constant 0 : i32
    %c0_i32_0 = arith.constant 0 : i32
    return %c0_i32, %arg1 : i32, i32
  }
  func.func @transform_2(%arg0: i32, %arg1: i32) -> (i32, i32) {
    %c0_i32 = arith.constant 0 : i32
    %c0_i32_0 = arith.constant 0 : i32
    return %c0_i32, %arg1 : i32, i32
  }
  func.func @transform_3(%arg0: i32, %arg1: i32) -> (i32, i32) {
    %c0_i32 = arith.constant 0 : i32
    return %arg0, %arg1 : i32, i32
  }
  func.func @transform_4(%arg0: i32, %arg1: i32) -> (i32, i32) {
    %c0_i32 = arith.constant 0 : i32
    return %arg0, %arg1 : i32, i32
  }
  func.func @transform_5(%arg0: i32, %arg1: i32) -> (i32, i32) {
    %c0_i32 = arith.constant 0 : i32
    return %arg0, %arg1 : i32, i32
  }
  func.func @transform_6(%arg0: i32, %arg1: i32) -> (i32, i32) {
    %c0_i32 = arith.constant 0 : i32
    return %arg0, %arg1 : i32, i32
  }
}

</mosaic_0001>

<bundles_post_ra>
// kernel: _image_rope_apply.1
= control target key start
LH: loop header
LB: loop body
LE: loop exit
PB: predicated region body
PF: predicated region fallthrough
CT: control target
= control target key end

     0   :  { %s370_s25 = smov 127   ;;  %s371_s30 = smov 1   ;;  %v49_v22 = vlaneseq  ;;  %s856_s3 = inlined_call_operand.vmem [shape: f32[8,1024], index: 3, kind: input, shape index: {}, may-alias: {3,5}]   ;;  %s857_s4 = inlined_call_operand.vmem [shape: f32[8,1024], index: 4, kind: input, shape index: {}, may-alias: {4,6}]   ;;  %s858_s0 = inlined_call_operand.vmem [shape: f32[1,1024], index: 0, kind: input, shape index: {}]   ;;  %s859_s1 = inlined_call_operand.vmem [shape: f32[1,1024], index: 1, kind: input, shape index: {}]   ;;  %s860_s2 = inlined_call_operand.vmem [shape: f32[1,1024], index: 2, kind: input, shape index: {}]   ;;  %s861_s5 = inlined_call_operand.vmem [shape: f32[8,1024], index: 5, kind: output, shape index: {0}, may-alias: {3,5}]   ;;  %s862_s6 = inlined_call_operand.vmem [shape: f32[8,1024], index: 6, kind: output, shape index: {1}, may-alias: {4,6}]  }
   0x1   :  { %v410_v0 = vld [vmem:[%s856_s3 + $0x10] sm:$0xff]  ;;  %v415_v1 = vld [vmem:[%s856_s3] sm:$0xff]  ;;  %v424_v2 = vld [vmem:[%s856_s3 + $0x18] sm:$0xff] }
   0x2   :  { %37 = vrot.lane.b32.xlu1 %v410_v0, %s370_s25  ;;  %33 = vrot.lane.b32.xlu0 %v415_v1, %s370_s25  ;;  %v429_v3 = vld [vmem:[%s856_s3 + $0x8] sm:$0xff]  ;;  %v443_v5 = vld [vmem:[%s856_s3 + $0x20] sm:$0xff]  ;;  %v87_v25 = vshrl.u32 %v49_v22, 7  ;;  %v551_v28 = vand.u32 127, %v49_v22 }
   0x3   :  { %v438_v4 = vld [vmem:[%s856_s3 + $0x28] sm:$0xff]  ;;  %v452_v6 = vld [vmem:[%s856_s3 + $0x38] sm:$0xff]  ;;  %v457_v7 = vld [vmem:[%s856_s3 + $0x30] sm:$0xff] }
   0x4   :  { %v466_v8 = vld [vmem:[%s857_s4 + $0x8] sm:$0xff]  ;;  %v471_v9 = vld [vmem:[%s857_s4] sm:$0xff]  ;;  %v480_v10 = vld [vmem:[%s857_s4 + $0x18] sm:$0xff]  ;;  %v96_v29 = vsub.s32 2, %v87_v25  ;;  %v553_v30 = vsub.s32 0, %v87_v25  ;;  %v92_v34 = vsub.s32 1, %v87_v25 }
   0x5   :  { %869 = vst [vmem:[#allocation2_spill] sm:$0xff] %v471_v9  ;;  %v485_v11 = vld [vmem:[%s857_s4 + $0x10] sm:$0xff]  ;;  %v494_v12 = vld [vmem:[%s857_s4 + $0x28] sm:$0xff]  ;;  %v499_v13 = vld [vmem:[%s857_s4 + $0x20] sm:$0xff]  ;;  %v100_v35 = vsub.s32 3, %v87_v25  ;;  %v104_v36 = vsub.s32 4, %v87_v25 }
   0x6   :  { %39 = vrot.lane.b32.xlu1 %v424_v2, %s370_s25  ;;  %35 = vrot.lane.b32.xlu0 %v429_v3, %s370_s25  ;;  %v508_v14 = vld [vmem:[%s857_s4 + $0x38] sm:$0xff]  ;;  %v513_v15 = vld [vmem:[%s857_s4 + $0x30] sm:$0xff]  ;;  %vm51_vm0 = vcmp.lt.s32.totalorder %v551_v28, 127  ;;  %v579_v44 = vsub.s32 7, %v87_v25  ;;  %vm76_vm1 = vcmp.lt.s32.totalorder %v551_v28, 1  ;;  %v108_v48 = vsub.s32 5, %v87_v25 }
   0x7   :  { %870 = vst [vmem:[#allocation3_spill] sm:$0xff] %v508_v14  ;;  %871 = vst [vmem:[#allocation4_spill] sm:$0xff] %v513_v15  ;;  %v22_v33 = vld [vmem:[%s858_s0] sm:$0xff]  ;;  %v589_v49 = vsub.s32 6, %v87_v25 }
   0x8   :  { %v23_v37 = vld [vmem:[%s859_s1] sm:$0xff]  ;;  %v566_v38 = vrot.slane %v22_v33, %v96_v29  ;;  %v569_v39 = vrot.slane %v22_v33, %v553_v30  ;;  %v575_v42 = vrot.slane %v22_v33, %v92_v34  ;;  %v577_v43 = vrot.slane %v22_v33, %v100_v35 }
   0x9   :  { %v581_v45 = vrot.slane %v23_v37, %v92_v34  ;;  %v583_v46 = vrot.slane %v22_v33, %v104_v36  ;;  %v594_v50 = vld [vmem:[%s860_s2] sm:$0xff]  ;;  %v598_v52 = vrot.slane %v23_v37, %v96_v29  ;;  %v605_v54 = vrot.slane %v23_v37, %v553_v30 }
   0xa   :  { %43 = vrot.lane.b32.xlu1 %v438_v4, %s370_s25  ;;  %41 = vrot.lane.b32.xlu0 %v443_v5, %s370_s25  ;;  %872 = vst [vmem:[#allocation5_spill] sm:$0xff] %v569_v39  ;;  %v128_v51 = vmul.f32 %v566_v38, %v410_v0  ;;  %v602_v53 = vmul.f32 %v569_v39, %v415_v1 }
   0xb   :  { %v127_v58 = vmul.f32 %v575_v42, %v429_v3  ;;  %v129_v59 = vmul.f32 %v577_v43, %v424_v2  ;;  %v618_v60 = vrot.slane %v22_v33, %v579_v44  ;;  %v130_v62 = vmul.f32 %v583_v46, %v443_v5 }
   0xc   :  { %v623_v63 = vrot.slane %v23_v37, %v100_v35  ;;  %v642_v25 = vrot.slane %v23_v37, %v108_v48 }
   0xd   :  { %874 = vst [vmem:[#allocation7_spill] sm:$0xff] %v618_v60 }
   0xe   :  { %47 = vrot.lane.b32.xlu1 %v452_v6, %s370_s25  ;;  %45 = vrot.lane.b32.xlu0 %v457_v7, %s370_s25 }
  0x12   :  { %266 = vrot.lane.b32.xlu1 %v466_v8, %s370_s25  ;;  %264 = vrot.lane.b32.xlu0 %v471_v9, %s370_s25 }
  0x16   :  { %270 = vrot.lane.b32.xlu1 %v480_v10, %s370_s25  ;;  %268 = vrot.lane.b32.xlu0 %v485_v11, %s370_s25 }
  0x1a   :  { %274 = vrot.lane.b32.xlu1 %v494_v12, %s370_s25  ;;  %272 = vrot.lane.b32.xlu0 %v499_v13, %s370_s25 }
  0x1e   :  { %278 = vrot.lane.b32.xlu1 %v508_v14, %s370_s25  ;;  %276 = vrot.lane.b32.xlu0 %v513_v15, %s370_s25 }
  0x22   :  { %62 = vrot.lane.b32.xlu1 %v429_v3, %s371_s30  ;;  %60 = vrot.lane.b32.xlu0 %v415_v1, %s371_s30  ;;  %v631_v3 = vrot.slane %v23_v37, %v104_v36 }
  0x26   :  { %66 = vrot.lane.b32.xlu1 %v424_v2, %s371_s30  ;;  %64 = vrot.lane.b32.xlu0 %v410_v0, %s371_s30  ;;  %v626_v0 = vrot.slane %v594_v50, %v92_v34  ;;  %v634_v2 = vrot.slane %v23_v37, %v579_v44  ;;  %v645_v34 = vrot.slane %v23_v37, %v589_v49 }
  0x2a   :  { %70 = vrot.lane.b32.xlu1 %v438_v4, %s371_s30  ;;  %68 = vrot.lane.b32.xlu0 %v443_v5, %s371_s30  ;;  %v640_v5 = vrot.slane %v22_v33, %v589_v49 }
  0x2e   :  { %74 = vrot.lane.b32.xlu1 %v452_v6, %s371_s30  ;;  %72 = vrot.lane.b32.xlu0 %v457_v7, %s371_s30 }
  0x32   :  { %290 = vrot.lane.b32.xlu1 %v466_v8, %s371_s30  ;;  %288 = vrot.lane.b32.xlu0 %v471_v9, %s371_s30  ;;  %v652_v9 = vrot.slane %v594_v50, %v96_v29 }
  0x36   :  { %294 = vrot.lane.b32.xlu1 %v480_v10, %s371_s30  ;;  %292 = vrot.lane.b32.xlu0 %v485_v11, %s371_s30 }
  0x3a   :  { %298 = vrot.lane.b32.xlu1 %v494_v12, %s371_s30  ;;  %296 = vrot.lane.b32.xlu0 %v499_v13, %s371_s30 }
  0x3e   :  { %302 = vrot.lane.b32.xlu1 %v508_v14, %s371_s30  ;;  %300 = vrot.lane.b32.xlu0 %v513_v15, %s371_s30 }
  0x74   :  { %v38_v16 = vpop.permute.xlu1 %37  ;;  %v535_v17 = vpop.permute.xlu0 %33 }
  0x78   :  { %v40_v18 = vpop.permute.xlu1 %39  ;;  %v537_v19 = vpop.permute.xlu0 %35 }
  0x79   :  { %v57_v47 = vsel %vm51_vm0, %v537_v19, %v38_v16  ;;  %v56_v57 = vsel %vm51_vm0, %v38_v16, %v40_v18  ;;  %v636_v16 = vrot.slane %v22_v33, %v108_v48 }
  0x7a   :  { %v176_v61 = vmul.f32 %v581_v45, %v57_v47  ;;  %v177_v22 = vmul.f32 %v598_v52, %v56_v57  ;;  %v655_v57 = vrot.slane %v594_v50, %v100_v35  ;;  %v670_v35 = vrot.slane %v594_v50, %v104_v36 }
  0x7b   :  { %v131_v29 = vmul.f32 %v636_v16, %v438_v4 }
  0x7c   :  { %v539_v20 = vpop.permute.xlu1 %43  ;;  %v541_v21 = vpop.permute.xlu0 %41  ;;  %v184_v33 = vadd.f32 %v176_v61, %v127_v58  ;;  %v673_v58 = vrot.slane %v594_v50, %v108_v48  ;;  %v185_v61 = vadd.f32 %v177_v22, %v128_v51 }
  0x7d   :  { %v55_v1 = vsel %vm51_vm0, %v40_v18, %v541_v21  ;;  %v133_v18 = vmul.f32 %v618_v60, %v452_v6  ;;  %v54_v37 = vsel %vm51_vm0, %v541_v21, %v539_v20 }
  0x7e   :  { %v178_v39 = vmul.f32 %v623_v63, %v55_v1  ;;  %v179_v36 = vmul.f32 %v631_v3, %v54_v37 }
  0x80   :  { %v543_v23 = vpop.permute.xlu1 %47  ;;  %v545_v24 = vpop.permute.xlu0 %45  ;;  %v186_v22 = vadd.f32 %v178_v39, %v129_v59  ;;  %v704_v39 = vrot.slane %v594_v50, %v553_v30  ;;  %v717_v30 = vrot.slane %v594_v50, %v579_v44 }
  0x81   :  { %v53_v6 = vsel %vm51_vm0, %v539_v20, %v545_v24  ;;  %v59_v20 = vsel %vm51_vm0, %v543_v23, %v535_v17  ;;  %v52_v48 = vsel %vm51_vm0, %v545_v24, %v543_v23  ;;  %v132_v24 = vmul.f32 %v640_v5, %v457_v7 }
  0x82   :  { %v180_v60 = vmul.f32 %v642_v25, %v53_v6  ;;  %v182_v23 = vmul.f32 %v634_v2, %v59_v20  ;;  %v181_v59 = vmul.f32 %v645_v34, %v52_v48 }
  0x84   :  { %v547_v26 = vpop.permute.xlu1 %266  ;;  %v549_v27 = vpop.permute.xlu0 %264  ;;  %v188_v48 = vadd.f32 %v180_v60, %v131_v29  ;;  %v313_v60 = vmul.f32 %v466_v8, %v575_v42  ;;  %v189_v29 = vadd.f32 %v181_v59, %v132_v24 }
  0x88   :  { %v555_v31 = vpop.permute.xlu1 %270  ;;  %v557_v32 = vpop.permute.xlu0 %268 }
  0x8c   :  { %v571_v40 = vpop.permute.xlu1 %274  ;;  %v573_v41 = vpop.permute.xlu0 %272 }
  0x90   :  { %v607_v55 = vpop.permute.xlu1 %278  ;;  %v609_v56 = vpop.permute.xlu0 %276 }
  0x91   :  { %873 = vst [vmem:[#allocation6_spill] sm:$0xff] %v607_v55 }
  0x94   :  { %v63_v47 = vpop.permute.xlu1 %62  ;;  %v61_v15 = vpop.permute.xlu0 %60 }
  0x95   :  { %v83_v14 = vsel %vm76_vm1, %v61_v15, %v63_v47 }
  0x96   :  { %v233_v55 = vmul.f32 %v626_v0, %v83_v14  ;;  %v58_v14 = vsel %vm51_vm0, %v535_v17, %v537_v19 }
  0x98   :  { %v241_v21 = vadd.f32 %v233_v55, %v184_v33  ;;  %v67_v1 = vpop.permute.xlu1 %66  ;;  %v65_v4 = vpop.permute.xlu0 %64  ;;  %v175_v33 = vmul.f32 %v605_v54, %v58_v14  ;;  %v187_v14 = vadd.f32 %v179_v36, %v130_v62 }
  0x99   :  { %v81_v51 = vsel %vm76_vm1, %v65_v4, %v67_v1  ;;  %v82_v19 = vsel %vm76_vm1, %v63_v47, %v65_v4  ;;  %v709_v4 = vrot.slane %v594_v50, %v589_v49  ;;  %v190_v50 = vadd.f32 %v182_v23, %v133_v18 }
  0x9a   :  { %249 = vst [vmem:[%s861_s5 + $0x8] sm:$0xff] %v241_v21  ;;  %v234_v17 = vmul.f32 %v652_v9, %v82_v19  ;;  %v235_v55 = vmul.f32 %v655_v57, %v81_v51  ;;  %v183_v44 = vadd.f32 %v175_v33, %v602_v53  ;;  %v314_v18 = vmul.f32 %v485_v11, %v566_v38 }
  0x9b   :  { %v282_v11 = vsel %vm51_vm0, %v573_v41, %v571_v40  ;;  %v316_v38 = vmul.f32 %v499_v13, %v583_v46 }
  0x9c   :  { %v242_v47 = vadd.f32 %v234_v17, %v185_v61  ;;  %v243_v37 = vadd.f32 %v235_v55, %v186_v22  ;;  %v71_v6 = vpop.permute.xlu1 %70  ;;  %v69_v21 = vpop.permute.xlu0 %68  ;;  %v285_v61 = vsel %vm51_vm0, %v547_v26, %v557_v32 }
  0x9d   :  { %v79_v20 = vsel %vm76_vm1, %v69_v21, %v71_v6  ;;  %v80_v7 = vsel %vm76_vm1, %v67_v1, %v69_v21  ;;  %v284_v1 = vsel %vm51_vm0, %v557_v32, %v555_v31  ;;  %v321_v17 = vmul.f32 %v285_v61, %v581_v45  ;;  %v875_v61 = vld [vmem:[#allocation6_spill] sm:$0xff] }
  0x9e   :  { %250 = vst [vmem:[%s861_s5 + $0x10] sm:$0xff] %v242_v47  ;;  %251 = vst [vmem:[%s861_s5 + $0x18] sm:$0xff] %v243_v37  ;;  %v236_v49 = vmul.f32 %v670_v35, %v80_v7  ;;  %v237_v62 = vmul.f32 %v673_v58, %v79_v20  ;;  %v283_v32 = vsel %vm51_vm0, %v555_v31, %v573_v41 }
  0x9f   :  { %v322_v33 = vmul.f32 %v284_v1, %v598_v52  ;;  %v315_v37 = vmul.f32 %v480_v10, %v577_v43  ;;  %v281_v41 = vsel %vm51_vm0, %v571_v40, %v609_v56  ;;  %v286_v43 = vsel %vm51_vm0, %v549_v27, %v547_v26  ;;  %v880_v1 = vld [vmem:[#allocation4_spill] sm:$0xff] }
  0xa0   :  { %v244_v36 = vadd.f32 %v236_v49, %v187_v14  ;;  %v245_v51 = vadd.f32 %v237_v62, %v188_v48  ;;  %v75_v19 = vpop.permute.xlu1 %74  ;;  %v73_v22 = vpop.permute.xlu0 %72  ;;  %v329_v14 = vadd.f32 %v321_v17, %v313_v60  ;;  %v324_v48 = vmul.f32 %v282_v11, %v631_v3  ;;  %v877_v62 = vld [vmem:[#allocation2_spill] sm:$0xff]  ;;  %v879_v60 = vld [vmem:[#allocation3_spill] sm:$0xff] }
  0xa1   :  { %v84_v55 = vsel %vm76_vm1, %v75_v19, %v61_v15  ;;  %v77_v53 = vsel %vm76_vm1, %v73_v22, %v75_v19  ;;  %v78_v8 = vsel %vm76_vm1, %v71_v6, %v73_v22  ;;  %v323_v6 = vmul.f32 %v283_v32, %v623_v63 }
  0xa2   :  { %252 = vst [vmem:[%s861_s5 + $0x20] sm:$0xff] %v244_v36  ;;  %253 = vst [vmem:[%s861_s5 + $0x28] sm:$0xff] %v245_v51  ;;  %v232_v15 = vmul.f32 %v704_v39, %v84_v55  ;;  %v238_v42 = vmul.f32 %v709_v4, %v78_v8  ;;  %v239_v45 = vmul.f32 %v717_v30, %v77_v53 }
  0xa3   :  { %v330_v52 = vadd.f32 %v322_v33, %v314_v18  ;;  %v317_v63 = vmul.f32 %v494_v12, %v636_v16  ;;  %v331_v13 = vadd.f32 %v323_v6, %v315_v37  ;;  %v287_v26 = vsel %vm51_vm0, %v875_v61, %v549_v27  ;;  %v876_v16 = vld [vmem:[#allocation5_spill] sm:$0xff] }
  0xa4   :  { %v240_v31 = vadd.f32 %v232_v15, %v183_v44  ;;  %v246_v23 = vadd.f32 %v238_v42, %v189_v29  ;;  %v247_v24 = vadd.f32 %v239_v45, %v190_v50  ;;  %v291_v59 = vpop.permute.xlu1 %290  ;;  %v289_v47 = vpop.permute.xlu0 %288  ;;  %v325_v49 = vmul.f32 %v281_v41, %v642_v25  ;;  %v878_v50 = vld [vmem:[#allocation7_spill] sm:$0xff] }
  0xa5   :  { %v310_v21 = vsel %vm76_vm1, %v289_v47, %v291_v59  ;;  %v312_v44 = vmul.f32 %v877_v62, %v876_v16  ;;  %v319_v29 = vmul.f32 %v879_v60, %v878_v50  ;;  %v280_v27 = vsel %vm51_vm0, %v609_v56, %v875_v61 }
  0xa6   :  { %248 = vst [vmem:[%s861_s5] sm:$0xff] %v240_v31  ;;  %254 = vst [vmem:[%s861_s5 + $0x30] sm:$0xff] %v246_v23  ;;  %v337_v10 = vmul.f32 %v310_v21, %v626_v0  ;;  %v320_v25 = vmul.f32 %v286_v43, %v605_v54  ;;  %v318_v36 = vmul.f32 %v880_v1, %v640_v5 }
  0xa7   :  { %255 = vst [vmem:[%s861_s5 + $0x38] sm:$0xff] %v247_v24  ;;  %v332_v22 = vadd.f32 %v324_v48, %v316_v38  ;;  %v327_v17 = vmul.f32 %v287_v26, %v634_v2  ;;  %v326_v56 = vmul.f32 %v280_v27, %v645_v34  ;;  %v333_v8 = vadd.f32 %v325_v49, %v317_v63 }
  0xa8   :  { %v345_v20 = vadd.f32 %v337_v10, %v329_v14  ;;  %v295_v7 = vpop.permute.xlu1 %294  ;;  %v293_v0 = vpop.permute.xlu0 %292  ;;  %v328_v5 = vadd.f32 %v320_v25, %v312_v44 }
  0xa9   :  { %v308_v46 = vsel %vm76_vm1, %v293_v0, %v295_v7  ;;  %v309_v40 = vsel %vm76_vm1, %v291_v59, %v293_v0  ;;  %v335_v18 = vadd.f32 %v327_v17, %v319_v29  ;;  %v334_v23 = vadd.f32 %v326_v56, %v318_v36 }
  0xaa   :  { %353 = vst [vmem:[%s862_s6 + $0x8] sm:$0xff] %v345_v20  ;;  %v338_v12 = vmul.f32 %v309_v40, %v652_v9  ;;  %v339_v3 = vmul.f32 %v308_v46, %v655_v57 }
  0xac   :  { %v346_v51 = vadd.f32 %v338_v12, %v330_v52  ;;  %v347_v9 = vadd.f32 %v339_v3, %v331_v13  ;;  %v299_v19 = vpop.permute.xlu1 %298  ;;  %v297_v57 = vpop.permute.xlu0 %296 }
  0xad   :  { %v306_v55 = vsel %vm76_vm1, %v297_v57, %v299_v19  ;;  %v307_v53 = vsel %vm76_vm1, %v295_v7, %v297_v57 }
  0xae   :  { %354 = vst [vmem:[%s862_s6 + $0x10] sm:$0xff] %v346_v51  ;;  %355 = vst [vmem:[%s862_s6 + $0x18] sm:$0xff] %v347_v9  ;;  %v340_v54 = vmul.f32 %v307_v53, %v670_v35  ;;  %v341_v2 = vmul.f32 %v306_v55, %v673_v58 }
  0xb0   :  { %v348_v32 = vadd.f32 %v340_v54, %v332_v22  ;;  %v349_v15 = vadd.f32 %v341_v2, %v333_v8  ;;  %v303_v42 = vpop.permute.xlu1 %302  ;;  %v301_v45 = vpop.permute.xlu0 %300 }
  0xb1   :  { %v311_v34 = vsel %vm76_vm1, %v303_v42, %v289_v47  ;;  %v304_v33 = vsel %vm76_vm1, %v301_v45, %v303_v42  ;;  %v305_v31 = vsel %vm76_vm1, %v299_v19, %v301_v45 }
  0xb2   :  { %356 = vst [vmem:[%s862_s6 + $0x20] sm:$0xff] %v348_v32  ;;  %357 = vst [vmem:[%s862_s6 + $0x28] sm:$0xff] %v349_v15  ;;  %v336_v35 = vmul.f32 %v311_v34, %v704_v39  ;;  %v342_v58 = vmul.f32 %v305_v31, %v709_v4  ;;  %v343_v24 = vmul.f32 %v304_v33, %v717_v30 }
  0xb4   :  { %v344_v59 = vadd.f32 %v336_v35, %v328_v5  ;;  %v350_v47 = vadd.f32 %v342_v58, %v334_v23  ;;  %v351_v37 = vadd.f32 %v343_v24, %v335_v18 }
  0xb6   :  { %352 = vst [vmem:[%s862_s6] sm:$0xff] %v344_v59  ;;  %358 = vst [vmem:[%s862_s6 + $0x30] sm:$0xff] %v350_v47 }
  0xb7   :  { %359 = vst [vmem:[%s862_s6 + $0x38] sm:$0xff] %v351_v37 }

</bundles_post_ra>
